<compile_context>
chip_gen: v6e
topology: v6e:2x2x1
jax: 0.10.0
libtpu: 0.0.40
codegen_flags: <defaults>
</compile_context>

<pallas_src>
import jax
import jax.numpy as jnp
from jax.experimental import pallas as pl
from jax.experimental.pallas import tpu as pltpu


def _round_up(x, m):
    return (x + m - 1) // m * m


def _cdiv(a, b):
    return -(-a // b)


def _physical_vmem_bytes():
    """Best-effort query of per-core VMEM capacity; conservative fallback."""
    try:
        info = pltpu.get_tpu_info()
        cap = getattr(info, "vmem_capacity_bytes", None)
        if cap:
            return int(cap)
    except Exception:
        pass
    return 64 * 1024 * 1024  # v7x-sized conservative default


# --------------------------------------------------------------------------
# Kernels
# --------------------------------------------------------------------------
def _gated_sae_resident_kernel(x_ref, w_enc_t_ref, w_dec_t_ref, dec_bias_ref,
                               coefs_ref, out_ref):
    """One batch tile with the full weight set resident in VMEM.

    x_ref        : [TB, D]   bf16 input activations
    w_enc_t_ref  : [D, S]    encoder.weight.T (bf16, whole dict)
    w_dec_t_ref  : [S, D]    decoder.weight.T (bf16, whole dict)
    dec_bias_ref : [1, D]    decoder_bias (f32)
    coefs_ref    : [8, S]    rows 0..2 = exp(r_mag), gate_bias, mag_bias (f32)
    out_ref      : [TB, D]   x_hat (bf16)
    """
    dec_bias = dec_bias_ref[...]                                  # [1, D] f32
    xc = x_ref[...].astype(jnp.float32) - dec_bias                # [TB, D] f32
    x_enc = jnp.dot(xc.astype(jnp.bfloat16), w_enc_t_ref[...],
                    preferred_element_type=jnp.float32)           # [TB, S] f32

    exp_r_mag = coefs_ref[0:1, :]
    gate_bias = coefs_ref[1:2, :]
    mag_bias = coefs_ref[2:3, :]
    pi_gate = x_enc + gate_bias
    pi_mag = exp_r_mag * x_enc + mag_bias
    f = jnp.where(pi_gate > 0, jnp.maximum(pi_mag, 0.0), 0.0)

    x_hat = jnp.dot(f.astype(jnp.bfloat16), w_dec_t_ref[...],
                    preferred_element_type=jnp.float32) + dec_bias
    out_ref[...] = x_hat.astype(out_ref.dtype)


def _gated_sae_stream_kernel(x_ref, w_enc_t_ref, w_dec_t_ref, dec_bias_ref,
                             coefs_ref, out_ref, xc_ref, acc_ref):
    """One (batch tile, S chunk) step; S is the sequential ("arbitrary") axis.

    xc_ref : [TB, D] bf16 scratch holding (x - decoder_bias), computed once per
             batch tile (hoisted out of the reduction loop).
    acc_ref: [TB, D] f32 decode accumulator (f32 kept for exactness across S
             chunks; the HBM output itself is bf16).
    """
    k = pl.program_id(1)

    @pl.when(k == 0)
    def _():
        xc_ref[...] = (x_ref[...].astype(jnp.float32)
                       - dec_bias_ref[...]).astype(jnp.bfloat16)
        acc_ref[...] = jnp.zeros_like(acc_ref)

    x_enc = jnp.dot(xc_ref[...], w_enc_t_ref[...],
                    preferred_element_type=jnp.float32)           # [TB, TS] f32

    exp_r_mag = coefs_ref[0:1, :]
    gate_bias = coefs_ref[1:2, :]
    mag_bias = coefs_ref[2:3, :]
    pi_gate = x_enc + gate_bias
    pi_mag = exp_r_mag * x_enc + mag_bias
    f = jnp.where(pi_gate > 0, jnp.maximum(pi_mag, 0.0), 0.0)

    acc_ref[...] += jnp.dot(f.astype(jnp.bfloat16), w_dec_t_ref[...],
                            preferred_element_type=jnp.float32)

    @pl.when(k == pl.num_programs(1) - 1)
    def _():
        out_ref[...] = (acc_ref[...] + dec_bias_ref[...]).astype(out_ref.dtype)


# --------------------------------------------------------------------------
# Wrapper
# --------------------------------------------------------------------------
def gated_autoencoder_forward(x, w_enc, w_dec, dec_bias, r_mag, gate_bias,
                              mag_bias, *, tile_b=None, tile_s=None,
                              out_dtype=jnp.bfloat16):
    """Forward pass of GatedAutoEncoder.

    x: [B, D]; w_enc: [S, D]; w_dec: [D, S]; biases [D] / [S].
    Returns x_hat: [B, D] in `out_dtype` (bf16 by default, matching .half()).
    Passing `tile_s` forces the S-streaming path.
    """
    B, D = x.shape
    S = w_enc.shape[0]
    f32, bf16 = jnp.float32, jnp.bfloat16

    D_pad = _round_up(D, 128)
    S_pad128 = _round_up(S, 128)

    vmem_phys = _physical_vmem_bytes()
    # Leave Mosaic-internal headroom: ~52 MiB cap on 64-MiB parts (v7x),
    # ~100 MiB on 128-MiB parts (v5e/v6e).
    vmem_cap = (100 << 20) if vmem_phys >= (96 << 20) else (52 << 20)

    # ---- batch tile --------------------------------------------------------
    if tile_b is None:
        if B <= 512:
            TB = max(8, _round_up(B, 8))
            if B >= 256:          # keep >=2 batch tiles so both v7x cores work
                TB = _round_up(_cdiv(B, 2), 8)
        else:
            n_tiles = _cdiv(B, 512)
            TB = _round_up(_cdiv(B, n_tiles), 8)
    else:
        TB = max(8, _round_up(tile_b, 8))

    # ---- path selection ----------------------------------------------------
    def resident_vmem(tb):
        w = 2 * 2 * (D_pad * S_pad128 * 2)        # enc+dec bf16, 2 buffers each
        xio = 2 * 2 * (tb * D_pad * 2)            # x + out bf16, double-buffered
        small = 2 * (8 * S_pad128 * 4 + D_pad * 4)
        interm = 4 * tb * S_pad128 * 4            # x_enc / gate temporaries
        return w + xio + small + interm

    def stream_vmem(tb, ts):
        w = 2 * 2 * (D_pad * ts * 2)              # enc+dec chunks, double-buffered
        xio = 2 * 2 * (tb * D_pad * 2)
        scratch = tb * D_pad * (2 + 4)            # xc (bf16) + acc (f32)
        small = 2 * (8 * ts * 4 + D_pad * 4)
        interm = 4 * tb * ts * 4
        return w + xio + scratch + small + interm

    use_resident = (tile_s is None) and (resident_vmem(TB) <= vmem_cap)

    if use_resident:
        S_pad = S_pad128
        TS = S_pad
        vmem_needed = resident_vmem(TB)
    else:
        TS = 512 if tile_s is None else _round_up(tile_s, 128)
        TS = max(128, min(TS, S_pad128))
        while stream_vmem(TB, TS) > vmem_cap and TS > 128:
            TS = max(128, TS // 2)
        while stream_vmem(TB, TS) > vmem_cap and TB > 8:
            TB = max(8, _round_up(TB // 2, 8))
        S_pad = _round_up(S, TS)
        vmem_needed = stream_vmem(TB, TS)

    B_pad = _round_up(B, TB)
    vmem_limit = int(min(vmem_cap, max(32 << 20, vmem_needed * 3 // 2)))

    # ---- pad / pre-transpose / pack (zero padding is exact: padded S columns
    #      give x_enc = 0 -> gate closed; padded W_dec rows are zero) ---------
    x_p = jnp.zeros((B_pad, D_pad), bf16).at[:B, :D].set(x.astype(bf16))
    w_enc_t = jnp.zeros((D_pad, S_pad), bf16).at[:D, :S].set(w_enc.T.astype(bf16))
    w_dec_t = jnp.zeros((S_pad, D_pad), bf16).at[:S, :D].set(w_dec.T.astype(bf16))
    dec_bias_2d = jnp.zeros((1, D_pad), f32).at[0, :D].set(dec_bias.astype(f32))
    coefs = (jnp.zeros((8, S_pad), f32)
             .at[0, :S].set(jnp.exp(r_mag.astype(f32)))     # exp hoisted here
             .at[1, :S].set(gate_bias.astype(f32))
             .at[2, :S].set(mag_bias.astype(f32)))

    out_bytes = B_pad * D_pad * jnp.dtype(out_dtype).itemsize
    n_b_tiles = B_pad // TB
    weight_bytes = (w_enc_t.size + w_dec_t.size) * 2
    if use_resident:
        bytes_accessed = x_p.size * 2 + weight_bytes + coefs.size * 4 + out_bytes
    else:
        # weights (and coef rows) are re-streamed once per batch tile
        bytes_accessed = (x_p.size * 2 + out_bytes
                          + n_b_tiles * (weight_bytes + coefs.size * 4))
    cost = pl.CostEstimate(flops=4 * B_pad * D_pad * S_pad,
                           transcendentals=0,
                           bytes_accessed=int(bytes_accessed))

    if use_resident:
        out_padded = pl.pallas_call(
            _gated_sae_resident_kernel,
            out_shape=jax.ShapeDtypeStruct((B_pad, D_pad), out_dtype),
            grid_spec=pltpu.PrefetchScalarGridSpec(
                num_scalar_prefetch=0,
                grid=(B_pad // TB,),
                in_specs=[
                    pl.BlockSpec((TB, D_pad), lambda i: (i, 0)),     # x tile
                    pl.BlockSpec((D_pad, S_pad), lambda i: (0, 0)),  # W_enc.T
                    pl.BlockSpec((S_pad, D_pad), lambda i: (0, 0)),  # W_dec.T
                    pl.BlockSpec((1, D_pad), lambda i: (0, 0)),      # dec bias
                    pl.BlockSpec((8, S_pad), lambda i: (0, 0)),      # coefs
                ],
                out_specs=pl.BlockSpec((TB, D_pad), lambda i: (i, 0)),
            ),
            compiler_params=pltpu.CompilerParams(
                dimension_semantics=("parallel",),
                vmem_limit_bytes=vmem_limit),
            cost_estimate=cost,
        )(x_p, w_enc_t, w_dec_t, dec_bias_2d, coefs)
    else:
        out_padded = pl.pallas_call(
            _gated_sae_stream_kernel,
            out_shape=jax.ShapeDtypeStruct((B_pad, D_pad), out_dtype),
            grid_spec=pltpu.PrefetchScalarGridSpec(
                num_scalar_prefetch=0,
                grid=(B_pad // TB, S_pad // TS),
                in_specs=[
                    pl.BlockSpec((TB, D_pad), lambda i, k: (i, 0)),  # x tile
                    pl.BlockSpec((D_pad, TS), lambda i, k: (0, k)),  # W_enc.T chunk
                    pl.BlockSpec((TS, D_pad), lambda i, k: (k, 0)),  # W_dec.T chunk
                    pl.BlockSpec((1, D_pad), lambda i, k: (0, 0)),   # dec bias
                    pl.BlockSpec((8, TS), lambda i, k: (0, k)),      # coefs chunk
                ],
                out_specs=pl.BlockSpec((TB, D_pad), lambda i, k: (i, 0)),
                scratch_shapes=[pltpu.VMEM((TB, D_pad), bf16),       # xc
                                pltpu.VMEM((TB, D_pad), f32)],       # acc
            ),
            compiler_params=pltpu.CompilerParams(
                dimension_semantics=("parallel", "arbitrary"),
                vmem_limit_bytes=vmem_limit),
            cost_estimate=cost,
        )(x_p, w_enc_t, w_dec_t, dec_bias_2d, coefs)

    return out_padded[:B, :D]


def reference_forward(x, w_enc, w_dec, dec_bias, r_mag, gate_bias, mag_bias):
    """Pure-JAX f32 reference mirroring the PyTorch forward()."""
    x_enc = (x - dec_bias) @ w_enc.T
    pi_gate = x_enc + gate_bias
    f_gate = (pi_gate > 0).astype(x.dtype)
    pi_mag = jnp.exp(r_mag) * x_enc + mag_bias
    f_mag = jnp.maximum(pi_mag, 0.0)
    f = f_gate * f_mag
    return f @ w_dec.T + dec_bias


if __name__ == "__main__":
    # Small shapes consistent with the module: activation_dim=128, dict_size=512.
    B, D, S = 8, 128, 512
    key = jax.random.PRNGKey(0)
    k_x, k_enc, k_dec = jax.random.split(key, 3)

    x = jax.random.normal(k_x, (B, D), dtype=jnp.float32)

    # Deterministic parameter init mirroring _reset_parameters():
    #   decoder_bias / r_mag / gate_bias / mag_bias = zeros
    #   decoder.weight ~ randn, normalized per-column (norm over dim=0)
    #   encoder.weight: nn.Linear default -> uniform(-1/sqrt(D), 1/sqrt(D))
    dec_bias = jnp.zeros((D,), dtype=jnp.float32)
    r_mag = jnp.zeros((S,), dtype=jnp.float32)
    gate_bias = jnp.zeros((S,), dtype=jnp.float32)
    mag_bias = jnp.zeros((S,), dtype=jnp.float32)

    w_dec = jax.random.normal(k_dec, (D, S), dtype=jnp.float32)
    w_dec = w_dec / jnp.linalg.norm(w_dec, axis=0, keepdims=True)
    bound = 1.0 / jnp.sqrt(jnp.float32(D))
    w_enc = jax.random.uniform(k_enc, (S, D), dtype=jnp.float32,
                               minval=-bound, maxval=bound)

    x_hat_ref = reference_forward(x, w_enc, w_dec, dec_bias, r_mag,
                                  gate_bias, mag_bias)

    # Path 1: VMEM-resident weights (auto-selected for these small shapes).
    x_hat_res = gated_autoencoder_forward(x, w_enc, w_dec, dec_bias, r_mag,
                                          gate_bias, mag_bias)
    x_hat_res = jax.block_until_ready(x_hat_res).astype(jnp.float32)

    # Path 2: force the S-streaming / f32-accumulator path (tile_s=256 -> 2
    # reduction steps over S).
    x_hat_str = gated_autoencoder_forward(x, w_enc, w_dec, dec_bias, r_mag,
                                          gate_bias, mag_bias, tile_s=256)
    x_hat_str = jax.block_until_ready(x_hat_str).astype(jnp.float32)

    # bf16 operands / bf16 output with f32 accumulation -> ~1e-2 tolerance.
    for name, x_hat in (("resident", x_hat_res), ("streaming", x_hat_str)):
        assert x_hat.shape == (B, D)
        rel = jnp.linalg.norm(x_hat - x_hat_ref) / (
            jnp.linalg.norm(x_hat_ref) + 1e-12)
        max_abs = jnp.max(jnp.abs(x_hat - x_hat_ref))
        assert rel < 3e-2, f"[{name}] relative error too large: {rel}"
        assert max_abs < 1.5e-1, f"[{name}] max abs error too large: {max_abs}"

    print("KERNEL_OK")
</pallas_src>

<mosaic_0001>
module attributes {stable_mosaic.version = 11 : i64} {
  func.func @_gated_sae_resident_kernel(%arg0: i32, %arg1: memref<8x128xbf16, #tpu.memory_space<vmem>>, %arg2: memref<128x512xbf16, #tpu.memory_space<vmem>>, %arg3: memref<512x128xbf16, #tpu.memory_space<vmem>>, %arg4: memref<1x128xf32, #tpu.memory_space<vmem>>, %arg5: memref<8x512xf32, #tpu.memory_space<vmem>>, %arg6: memref<8x128xbf16, #tpu.memory_space<vmem>>) attributes {dimension_semantics = [#tpu.dimension_semantics<parallel>], iteration_bounds = array<i64: 1>, scalar_prefetch = 0 : i64, scratch_operands = 0 : i64, tpu.core_type = #tpu.core_type<tc>, window_params = [{transform_indices = @transform_0, window_bounds = array<i64: 8, 128>}, {pipeline_mode = #tpu.pipeline_mode<synchronous>, transform_indices = @transform_1, window_bounds = array<i64: 128, 512>}, {pipeline_mode = #tpu.pipeline_mode<synchronous>, transform_indices = @transform_2, window_bounds = array<i64: 512, 128>}, {pipeline_mode = #tpu.pipeline_mode<synchronous>, transform_indices = @transform_3, window_bounds = array<i64: 1, 128>}, {pipeline_mode = #tpu.pipeline_mode<synchronous>, transform_indices = @transform_4, window_bounds = array<i64: 8, 512>}, {transform_indices = @transform_5, window_bounds = array<i64: 8, 128>}]} {
    %c0 = arith.constant 0 : index
    %c0_0 = arith.constant 0 : index
    %0 = vector.load %arg4[%c0, %c0_0] : memref<1x128xf32, #tpu.memory_space<vmem>>, vector<1x128xf32>
    %c0_1 = arith.constant 0 : index
    %c0_2 = arith.constant 0 : index
    %1 = vector.load %arg1[%c0_1, %c0_2] : memref<8x128xbf16, #tpu.memory_space<vmem>>, vector<8x128xbf16>
    %2 = arith.extf %1 : vector<8x128xbf16> to vector<8x128xf32>
    %3 = vector.broadcast %0 : vector<1x128xf32> to vector<8x128xf32>
    %4 = arith.subf %2, %3 : vector<8x128xf32>
    %5 = arith.truncf %4 : vector<8x128xf32> to vector<8x128xbf16>
    %c0_3 = arith.constant 0 : index
    %c0_4 = arith.constant 0 : index
    %6 = vector.load %arg2[%c0_3, %c0_4] : memref<128x512xbf16, #tpu.memory_space<vmem>>, vector<128x512xbf16>
    %cst = arith.constant dense<0.000000e+00> : vector<8x512xf32>
    %7 = tpu.matmul %5, %6, %cst {dimension_numbers = #tpu.dot_dimension_numbers<[1], [0], [0], [1], [0, 0, 1, 1], [], []>} : vector<8x128xbf16>, vector<128x512xbf16>, vector<8x512xf32> -> vector<8x512xf32>
    %c0_5 = arith.constant 0 : index
    %c0_6 = arith.constant 0 : index
    %8 = vector.load %arg5[%c0_5, %c0_6] : memref<8x512xf32, #tpu.memory_space<vmem>>, vector<1x512xf32>
    %c1 = arith.constant 1 : index
    %c0_7 = arith.constant 0 : index
    %9 = vector.load %arg5[%c1, %c0_7] : memref<8x512xf32, #tpu.memory_space<vmem>>, vector<1x512xf32>
    %c2 = arith.constant 2 : index
    %c0_8 = arith.constant 0 : index
    %10 = vector.load %arg5[%c2, %c0_8] : memref<8x512xf32, #tpu.memory_space<vmem>>, vector<1x512xf32>
    %11 = vector.broadcast %9 : vector<1x512xf32> to vector<8x512xf32>
    %12 = arith.addf %7, %11 : vector<8x512xf32>
    %13 = vector.broadcast %8 : vector<1x512xf32> to vector<8x512xf32>
    %14 = arith.mulf %13, %7 : vector<8x512xf32>
    %15 = vector.broadcast %10 : vector<1x512xf32> to vector<8x512xf32>
    %16 = arith.addf %14, %15 : vector<8x512xf32>
    %cst_9 = arith.constant 0.000000e+00 : f32
    %17 = vector.broadcast %cst_9 : f32 to vector<8x512xf32>
    %18 = arith.cmpf ogt, %12, %17 : vector<8x512xf32>
    %cst_10 = arith.constant 0.000000e+00 : f32
    %19 = vector.broadcast %cst_10 : f32 to vector<8x512xf32>
    %20 = arith.maximumf %16, %19 : vector<8x512xf32>
    %cst_11 = arith.constant 0.000000e+00 : f32
    %21 = vector.broadcast %cst_11 : f32 to vector<8x512xf32>
    %22 = arith.select %18, %20, %21 : vector<8x512xi1>, vector<8x512xf32>
    %23 = arith.truncf %22 : vector<8x512xf32> to vector<8x512xbf16>
    %c0_12 = arith.constant 0 : index
    %c0_13 = arith.constant 0 : index
    %24 = vector.load %arg3[%c0_12, %c0_13] : memref<512x128xbf16, #tpu.memory_space<vmem>>, vector<512x128xbf16>
    %cst_14 = arith.constant dense<0.000000e+00> : vector<8x128xf32>
    %25 = tpu.matmul %23, %24, %cst_14 {dimension_numbers = #tpu.dot_dimension_numbers<[1], [0], [0], [1], [0, 0, 1, 1], [], []>} : vector<8x512xbf16>, vector<512x128xbf16>, vector<8x128xf32> -> vector<8x128xf32>
    %26 = vector.broadcast %0 : vector<1x128xf32> to vector<8x128xf32>
    %27 = arith.addf %25, %26 : vector<8x128xf32>
    %28 = arith.truncf %27 : vector<8x128xf32> to vector<8x128xbf16>
    %c0_15 = arith.constant 0 : index
    %c0_16 = arith.constant 0 : index
    %29 = vector.load %arg6[%c0_15, %c0_16] : memref<8x128xbf16, #tpu.memory_space<vmem>>, vector<8x128xbf16>
    tpu.vector_store %arg6[%c0_15, %c0_16], %28 {strides = array<i32>} : memref<8x128xbf16, #tpu.memory_space<vmem>>, vector<8x128xbf16>,
    return
  }
  func.func @transform_0(%arg0: i32) -> (i32, i32) {
    %c0_i32 = arith.constant 0 : i32
    %c0_i32_0 = arith.constant 0 : i32
    return %arg0, %c0_i32 : i32, i32
  }
  func.func @transform_1(%arg0: i32) -> (i32, i32) {
    %c0_i32 = arith.constant 0 : i32
    %c0_i32_0 = arith.constant 0 : i32
    %c0_i32_1 = arith.constant 0 : i32
    return %c0_i32, %c0_i32_0 : i32, i32
  }
  func.func @transform_2(%arg0: i32) -> (i32, i32) {
    %c0_i32 = arith.constant 0 : i32
    %c0_i32_0 = arith.constant 0 : i32
    %c0_i32_1 = arith.constant 0 : i32
    return %c0_i32, %c0_i32_0 : i32, i32
  }
  func.func @transform_3(%arg0: i32) -> (i32, i32) {
    %c0_i32 = arith.constant 0 : i32
    %c0_i32_0 = arith.constant 0 : i32
    %c0_i32_1 = arith.constant 0 : i32
    return %c0_i32, %c0_i32_0 : i32, i32
  }
  func.func @transform_4(%arg0: i32) -> (i32, i32) {
    %c0_i32 = arith.constant 0 : i32
    %c0_i32_0 = arith.constant 0 : i32
    %c0_i32_1 = arith.constant 0 : i32
    return %c0_i32, %c0_i32_0 : i32, i32
  }
  func.func @transform_5(%arg0: i32) -> (i32, i32) {
    %c0_i32 = arith.constant 0 : i32
    %c0_i32_0 = arith.constant 0 : i32
    return %arg0, %c0_i32 : i32, i32
  }
}

</mosaic_0001>

<bundles_post_ra>
// kernel: tpu_custom_call.1
= control target key start
LH: loop header
LB: loop body
LE: loop exit
PB: predicated region body
PF: predicated region fallthrough
CT: control target
= control target key end

     0   :  { %10 = vsyncpa [#allocation3], 0  ;;  %s1190_s0 = inlined_call_operand.hbm [shape: bf16[8,128], index: 0, kind: input, shape index: {}]   ;;  %s1191_s1 = inlined_call_operand.hbm [shape: bf16[128,512], index: 1, kind: input, shape index: {}]   ;;  %s1192_s2 = inlined_call_operand.hbm [shape: bf16[512,128], index: 2, kind: input, shape index: {}]   ;;  %s1193_s3 = inlined_call_operand.vmem [shape: f32[1,128], index: 3, kind: input, shape index: {}]   ;;  %s1194_s4 = inlined_call_operand.hbm [shape: f32[8,512], index: 4, kind: input, shape index: {}]   ;;  %s1195_s5 = inlined_call_operand.hbm [shape: bf16[8,128], index: 5, kind: output, shape index: {}]  }
   0x1   :  { %11 = vsyncpa [#allocation6], 0 }
   0x2   :  { %12 = vsyncpa [#allocation9], 0 }
   0x3   :  { %13 = vsyncpa [#allocation4], 0  ;;  %s1128_s18 = smov [#allocation5]  }
   0x4   :  { %s29_s19 = sshll.u32 %s1128_s18, 4  ;;  %s30_s19 = int_to_ptr.vmem [resolvable:$true] %s29_s19 }
   0x5   :  { %s1028_s20 = scalar_lea.vmem %s30_s19, 4096  ;;  %p1033_p1 = scmp.lt.s32.totalorder %s30_s19, %s30_s19 }
   0x6   :  { %p1029_p0 = scmp.ne.s32.totalorder %s30_s19, %s1028_s20  ;;  %p1034_p2 = scmp.lt.s32.totalorder %s1028_s20, %s1028_s20 }
   0x8   :  { %p1035_p3 = por %p1034_p2, %p1033_p1 }
   0xa   :  { %p1036_p4 = pnand %p1035_p3, %p1029_p0 }
   0xc   :  { %1039 = shalt.err (!%p1036_p4)
}
   0xd   :  { %s1129_s21 = smov 256   ;;  %s1130_s22 = smov 16  }
   0xe   :  { %35 = dma.hbm_to_vmem [thread:$0]  %s1191_s1, 4096, %s30_s19, [#allocation6], %s1129_s21, %s1129_s21, %s1130_s22  }
   0xf   :  { %s1131_s25 = smov [#allocation2]   ;;  %s1132_s27 = smov [#allocation7]  }
  0x10   :  { %s20_s26 = sshll.u32 %s1131_s25, 4  ;;  %s41_s28 = sshll.u32 %s1132_s27, 4  ;;  %s21_s26 = int_to_ptr.vmem [resolvable:$true] %s20_s26  ;;  %s42_s28 = int_to_ptr.vmem [resolvable:$true] %s41_s28 }
  0x11   :  { %s1048_s29 = scalar_lea.vmem %s21_s26, 64  ;;  %p1053_p6 = scmp.lt.s32.totalorder %s21_s26, %s21_s26 }
  0x12   :  { %p1049_p5 = scmp.ne.s32.totalorder %s21_s26, %s1048_s29  ;;  %p1054_p7 = scmp.lt.s32.totalorder %s1048_s29, %s1048_s29 }
  0x14   :  { %p1055_p8 = por %p1054_p7, %p1053_p6 }
  0x16   :  { %p1056_p9 = pnand %p1055_p8, %p1049_p5 }
  0x18   :  { %1059 = shalt.err (!%p1056_p9)
}
  0x19   :  { %23 = dma.hbm_to_vmem [thread:$0]  %s1190_s0, 64, %s21_s26, [#allocation3]  }
  0x1a   :  { %s1068_s7 = scalar_lea.vmem %s42_s28, 4096  ;;  %p1073_p11 = scmp.lt.s32.totalorder %s42_s28, %s42_s28 }
  0x1b   :  { %p1069_p10 = scmp.ne.s32.totalorder %s42_s28, %s1068_s7  ;;  %p1074_p12 = scmp.lt.s32.totalorder %s1068_s7, %s1068_s7 }
  0x1d   :  { %p1075_p13 = por %p1074_p12, %p1073_p11 }
  0x1f   :  { %p1076_p0 = pnand %p1075_p13, %p1069_p10 }
  0x21   :  { %1079 = shalt.err (!%p1076_p0)
}
  0x22   :  { %s1133_s1 = smov 64   ;;  %s1134_s8 = smov 4  }
  0x23   :  { %47 = dma.hbm_to_vmem [thread:$0]  %s1192_s2, 4096, %s42_s28, [#allocation6], %s1133_s1, %s1133_s1, %s1134_s8  }
  0x24   :  { %s1135_s11 = smov [#allocation8]  }
  0x25   :  { %s56_s12 = sshll.u32 %s1135_s11, 4  ;;  %s57_s12 = int_to_ptr.vmem [resolvable:$true] %s56_s12 }
  0x26   :  { %s1088_s13 = scalar_lea.vmem %s57_s12, 512  ;;  %p1093_p2 = scmp.lt.s32.totalorder %s57_s12, %s57_s12 }
  0x27   :  { %p1089_p1 = scmp.ne.s32.totalorder %s57_s12, %s1088_s13  ;;  %p1094_p3 = scmp.lt.s32.totalorder %s1088_s13, %s1088_s13 }
  0x29   :  { %p1095_p4 = por %p1094_p3, %p1093_p2 }
  0x2b   :  { %p1096_p5 = pnand %p1095_p4, %p1089_p1 }
  0x2d   :  { %1099 = shalt.err (!%p1096_p5)
}
  0x2e   :  { %59 = dma.hbm_to_vmem [thread:$0]  %s1194_s4, 512, %s57_s12, [#allocation9]  }
  0x2f   :  { %1120 = dma.done.wait [#allocation3], 64  }
  0x30   :  { %1121 = vsyncadd [#allocation3], 4294967232 }
  0x31   :  { %1122 = dma.done.wait [#allocation6], 8192  }
  0x32   :  { %1123 = vsyncadd [#allocation6], 4294959104 }
  0x33   :  { %1124 = dma.done.wait [#allocation9], 512  }
  0x34   :  { %1125 = vsyncadd [#allocation9], 4294966784  ;;  %v1136_v0 = vmov 0   ;;  %v940_v1 = vld [vmem:[#allocation5 + $0xe4] ss:$16 sps:$4 sm:$0xff]   ;;  %v988_v37 = vld [vmem:[#allocation7 + $0x78] sm:$0xff]  }
  0x35   :  { %308 = vmatprep.mubr.bf16.mxu0 %v1136_v0  ;;  %349 = vmatprep.mubr.bf16.mxu1 %v1136_v0  ;;  %v942_v2 = vld [vmem:[#allocation5 + $0xec] ss:$16 sps:$4 sm:$0xff]   ;;  %v944_v3 = vld [vmem:[#allocation5 + $0xe0] ss:$16 sps:$4 sm:$0xff]   ;;  %v945_v4 = vld [vmem:[#allocation5 + $0xe8] ss:$16 sps:$4 sm:$0xff]  }
  0x36   :  { %276 = vmatprep.subr.bf16.mxu0 %v940_v1  ;;  %317 = vmatprep.subr.bf16.mxu1 %v942_v2  ;;  %v946_v5 = vld [vmem:[#allocation5 + $0xc4] ss:$16 sps:$4 sm:$0xff]   ;;  %v948_v6 = vld [vmem:[#allocation5 + $0xcc] ss:$16 sps:$4 sm:$0xff]   ;;  %v950_v7 = vld [vmem:[#allocation5 + $0xc0] ss:$16 sps:$4 sm:$0xff]  }
  0x37   :  { %277 = vmatpush1.bf16.msra.mxu0 %v944_v3  ;;  %318 = vmatpush1.bf16.msra.mxu1 %v945_v4  ;;  %v951_v8 = vld [vmem:[#allocation5 + $0xc8] ss:$16 sps:$4 sm:$0xff]   ;;  %v952_v9 = vld [vmem:[#allocation5 + $0xa4] ss:$16 sps:$4 sm:$0xff]   ;;  %v954_v10 = vld [vmem:[#allocation5 + $0xac] ss:$16 sps:$4 sm:$0xff]  }
  0x38   :  { %278 = vmatprep.subr.bf16.mxu0 %v946_v5  ;;  %319 = vmatprep.subr.bf16.mxu1 %v948_v6  ;;  %v956_v11 = vld [vmem:[#allocation5 + $0xa0] ss:$16 sps:$4 sm:$0xff]   ;;  %v957_v12 = vld [vmem:[#allocation5 + $0xa8] ss:$16 sps:$4 sm:$0xff]   ;;  %v958_v13 = vld [vmem:[#allocation5 + $0x84] ss:$16 sps:$4 sm:$0xff]   ;;  %v364_v6 = vlaneseq }
  0x39   :  { %v960_v14 = vld [vmem:[#allocation5 + $0x8c] ss:$16 sps:$4 sm:$0xff]   ;;  %v962_v15 = vld [vmem:[#allocation5 + $0x80] ss:$16 sps:$4 sm:$0xff]   ;;  %v963_v16 = vld [vmem:[#allocation5 + $0x88] ss:$16 sps:$4 sm:$0xff]  }
  0x3a   :  { %v964_v17 = vld [vmem:[#allocation5 + $0x64] ss:$16 sps:$4 sm:$0xff]   ;;  %v966_v18 = vld [vmem:[#allocation5 + $0x6c] ss:$16 sps:$4 sm:$0xff]   ;;  %v968_v19 = vld [vmem:[#allocation5 + $0x60] ss:$16 sps:$4 sm:$0xff]  }
  0x3b   :  { %279 = vmatpush1.bf16.msra.mxu0 %v950_v7  ;;  %320 = vmatpush1.bf16.msra.mxu1 %v951_v8  ;;  %v969_v20 = vld [vmem:[#allocation5 + $0x68] ss:$16 sps:$4 sm:$0xff]   ;;  %v970_v21 = vld [vmem:[#allocation5 + $0x44] ss:$16 sps:$4 sm:$0xff]   ;;  %v972_v22 = vld [vmem:[#allocation5 + $0x4c] ss:$16 sps:$4 sm:$0xff]  }
  0x3c   :  { %280 = vmatprep.subr.bf16.mxu0 %v952_v9  ;;  %321 = vmatprep.subr.bf16.mxu1 %v954_v10  ;;  %v974_v23 = vld [vmem:[#allocation5 + $0x40] ss:$16 sps:$4 sm:$0xff]   ;;  %v975_v24 = vld [vmem:[#allocation5 + $0x48] ss:$16 sps:$4 sm:$0xff]   ;;  %v976_v25 = vld [vmem:[#allocation5 + $0x24] ss:$16 sps:$4 sm:$0xff]  }
  0x3d   :  { %v978_v26 = vld [vmem:[#allocation5 + $0x2c] ss:$16 sps:$4 sm:$0xff]   ;;  %v980_v28 = vld [vmem:[#allocation5 + $0x20] ss:$16 sps:$4 sm:$0xff]   ;;  %v981_v29 = vld [vmem:[#allocation5 + $0x28] ss:$16 sps:$4 sm:$0xff]  }
  0x3e   :  { %v74_v27 = vld [vmem:[#allocation2] sm:$0xf]  ;;  %v982_v30 = vld [vmem:[#allocation5 + $0x4] ss:$16 sps:$4 sm:$0xff]   ;;  %v986_v34 = vld [vmem:[#allocation5] ss:$16 sps:$4 sm:$0xff]  }
  0x3f   :  { %281 = vmatpush1.bf16.msra.mxu0 %v956_v11  ;;  %322 = vmatpush1.bf16.msra.mxu1 %v957_v12  ;;  %v75_v31 = vunpack.c.l.bf16 %v74_v27  ;;  %v1183_v32 = vld [vmem:[%s1193_s3] ss:$0 sm:$0xff]  ;;  %v987_v35 = vld [vmem:[#allocation5 + $0x8] ss:$16 sps:$4 sm:$0xff]   ;;  %v992_v42 = vld [vmem:[#allocation7 + $0x70] sm:$0xff]   ;;  %v365_v7 = vshrl.u32 %v364_v6, 7 }
  0x40   :  { %282 = vmatprep.subr.bf16.mxu0 %v958_v13  ;;  %323 = vmatprep.subr.bf16.mxu1 %v960_v14  ;;  %v984_v33 = vld [vmem:[#allocation5 + $0xc] ss:$16 sps:$4 sm:$0xff]   ;;  %v993_v43 = vld [vmem:[#allocation7 + $0xf0] sm:$0xff]   ;;  %v1000_v50 = vld [vmem:[#allocation7 + $0x60] sm:$0xff]   ;;  %s1137_s3 = smov [#allocation10]  }
  0x41   :  { %v82_v36 = vsub.f32 %v75_v31, %v1183_v32  ;;  %v989_v38 = vld [vmem:[#allocation7 + $0xf8] sm:$0xff]   ;;  %v994_v44 = vld [vmem:[#allocation7 + $0x30] sm:$0xff]   ;;  %v996_v46 = vld [vmem:[#allocation7 + $0x68] sm:$0xff]   ;;  %v366_v8 = vsub.s32 0, %v365_v7  ;;  %v374_v9 = vsub.s32 2, %v365_v7  ;;  %v370_v13 = vsub.s32 1, %v365_v7 }
  0x42   :  { %v990_v39 = vld [vmem:[#allocation7 + $0x38] sm:$0xff]   ;;  %v995_v45 = vld [vmem:[#allocation7 + $0xb0] sm:$0xff]   ;;  %v997_v47 = vld [vmem:[#allocation7 + $0xe8] sm:$0xff]   ;;  %v378_v14 = vsub.s32 3, %v365_v7  ;;  %s798_s15 = sshll.u32 %s1137_s3, 4  ;;  %s799_s15 = int_to_ptr.vmem [resolvable:$true] %s798_s15 }
  0x43   :  { %283 = vmatpush1.bf16.msra.mxu0 %v962_v15  ;;  %324 = vmatpush1.bf16.msra.mxu1 %v963_v16  ;;  %v83_v40 = vpack.c.bf16 %v82_v36, %v82_v36  ;;  %v991_v41 = vld [vmem:[#allocation7 + $0xb8] sm:$0xff]   ;;  %v998_v48 = vld [vmem:[#allocation7 + $0x28] sm:$0xff]   ;;  %v1001_v51 = vld [vmem:[#allocation7 + $0xe0] sm:$0xff]   ;;  %s1100_s16 = scalar_lea.vmem %s799_s15, 64  ;;  %p1105_p7 = scmp.lt.s32.totalorder %s799_s15, %s799_s15 }
  0x44   :  { %284 = vmatprep.subr.bf16.mxu0 %v964_v17  ;;  %325 = vmatprep.subr.bf16.mxu1 %v966_v18  ;;  %v999_v49 = vld [vmem:[#allocation7 + $0xa8] sm:$0xff]   ;;  %v1002_v52 = vld [vmem:[#allocation7 + $0x20] sm:$0xff]   ;;  %v1004_v54 = vld [vmem:[#allocation7 + $0x58] sm:$0xff]   ;;  %p1101_p6 = scmp.ne.s32.totalorder %s799_s15, %s1100_s16  ;;  %p1106_p8 = scmp.lt.s32.totalorder %s1100_s16, %s1100_s16 }
  0x45   :  { %v1003_v53 = vld [vmem:[#allocation7 + $0xa0] sm:$0xff]   ;;  %v1005_v55 = vld [vmem:[#allocation7 + $0xd8] sm:$0xff]   ;;  %v1008_v58 = vld [vmem:[#allocation7 + $0x50] sm:$0xff]  }
  0x46   :  { %v1006_v56 = vld [vmem:[#allocation7 + $0x18] sm:$0xff]   ;;  %v1009_v59 = vld [vmem:[#allocation7 + $0xd0] sm:$0xff]   ;;  %v1012_v62 = vld [vmem:[#allocation7 + $0x48] sm:$0xff]   ;;  %p1107_p9 = por %p1106_p8, %p1105_p7 }
  0x47   :  { %285 = vmatpush1.bf16.msra.mxu0 %v968_v19  ;;  %326 = vmatpush1.bf16.msra.mxu1 %v969_v20  ;;  %v1007_v57 = vld [vmem:[#allocation7 + $0x98] sm:$0xff]   ;;  %v1010_v60 = vld [vmem:[#allocation7 + $0x10] sm:$0xff]   ;;  %v1013_v63 = vld [vmem:[#allocation7 + $0xc8] sm:$0xff]  }
  0x48   :  { %286 = vmatprep.subr.bf16.mxu0 %v970_v21  ;;  %327 = vmatprep.subr.bf16.mxu1 %v972_v22  ;;  %v1011_v61 = vld [vmem:[#allocation7 + $0x90] sm:$0xff]   ;;  %v1014_v0 = vld [vmem:[#allocation7 + $0x8] sm:$0xff]   ;;  %v1016_v2 = vld [vmem:[#allocation7 + $0x40] sm:$0xff]   ;;  %p1108_p10 = pnand %p1107_p9, %p1101_p6 }
  0x49   :  { %v1015_v1 = vld [vmem:[#allocation7 + $0x88] sm:$0xff]   ;;  %v1017_v3 = vld [vmem:[#allocation7 + $0xc0] sm:$0xff]  }
  0x4a   :  { %v1018_v4 = vld [vmem:[#allocation7] sm:$0xff]  }
  0x4b   :  { %287 = vmatpush1.bf16.msra.mxu0 %v974_v23  ;;  %328 = vmatpush1.bf16.msra.mxu1 %v975_v24  ;;  %v1019_v5 = vld [vmem:[#allocation7 + $0x80] sm:$0xff]  }
  0x4c   :  { %288 = vmatprep.subr.bf16.mxu0 %v976_v25  ;;  %329 = vmatprep.subr.bf16.mxu1 %v978_v26  ;;  %v358_v10 = vld [vmem:[#allocation8] ss:$8 sm:$0xf]  ;;  %v360_v11 = vld [vmem:[#allocation8 + $0x1] ss:$8 sm:$0xf] }
  0x4d   :  { %v362_v12 = vld [vmem:[#allocation8 + $0x2] ss:$8 sm:$0xf]  ;;  %v392_v15 = vrot.slane %v358_v10, %v366_v8  ;;  %v400_v16 = vrot.slane %v358_v10, %v374_v9  ;;  %v367_v17 = vrot.slane %v360_v11, %v366_v8  ;;  %v371_v22 = vrot.slane %v360_v11, %v370_v13 }
  0x4e   :  { %v417_v18 = vrot.slane %v362_v12, %v366_v8  ;;  %v425_v19 = vrot.slane %v362_v12, %v374_v9  ;;  %v396_v23 = vrot.slane %v358_v10, %v370_v13  ;;  %v379_v24 = vrot.slane %v360_v11, %v378_v14 }
  0x4f   :  { %289 = vmatpush1.bf16.msra.mxu0 %v980_v28  ;;  %330 = vmatpush1.bf16.msra.mxu1 %v981_v29  ;;  %v404_v25 = vrot.slane %v358_v10, %v378_v14  ;;  %v375_v27 = vrot.slane %v360_v11, %v374_v9  ;;  %v421_v31 = vrot.slane %v362_v12, %v370_v13 }
  0x50   :  { %290 = vmatprep.subr.bf16.mxu0 %v982_v30  ;;  %331 = vmatprep.subr.bf16.mxu1 %v984_v33 }
  0x53   :  { %291 = vmatpush1.bf16.msra.mxu0 %v986_v34  ;;  %332 = vmatpush1.bf16.msra.mxu1 %v987_v35  ;;  %v429_v34 = vrot.slane %v362_v12, %v378_v14 }
  0x54   :  { %886 = vmatprep.subr.bf16.mxu0 %v988_v37  ;;  %908 = vmatprep.subr.bf16.mxu1 %v989_v38 }
  0x56   :  { %309 = vmatmul.mubr.bf16.vlgmr.msra.gmra.mxu0 %v83_v40  ;;  %350 = vmatmul.mubr.bf16.vlgmr.msra.gmra.mxu1 %v83_v40 }
  0x57   :  { %887 = vmatpush3.bf16.msra.mxu0 %v990_v39  ;;  %909 = vmatpush3.bf16.msra.mxu1 %v991_v41 }
  0x58   :  { %888 = vmatprep.subr.bf16.mxu0 %v992_v42  ;;  %910 = vmatprep.subr.bf16.mxu1 %v993_v43 }
  0x5b   :  { %889 = vmatpush3.bf16.msra.mxu0 %v994_v44  ;;  %911 = vmatpush3.bf16.msra.mxu1 %v995_v45 }
  0x5c   :  { %890 = vmatprep.subr.bf16.mxu0 %v996_v46  ;;  %912 = vmatprep.subr.bf16.mxu1 %v997_v47 }
  0x5f   :  { %891 = vmatpush3.bf16.msra.mxu0 %v998_v48  ;;  %913 = vmatpush3.bf16.msra.mxu1 %v999_v49 }
  0x60   :  { %892 = vmatprep.subr.bf16.mxu0 %v1000_v50  ;;  %914 = vmatprep.subr.bf16.mxu1 %v1001_v51 }
  0x63   :  { %893 = vmatpush3.bf16.msra.mxu0 %v1002_v52  ;;  %915 = vmatpush3.bf16.msra.mxu1 %v1003_v53 }
  0x64   :  { %894 = vmatprep.subr.bf16.mxu0 %v1004_v54  ;;  %916 = vmatprep.subr.bf16.mxu1 %v1005_v55 }
  0x67   :  { %895 = vmatpush3.bf16.msra.mxu0 %v1006_v56  ;;  %917 = vmatpush3.bf16.msra.mxu1 %v1007_v57 }
  0x68   :  { %896 = vmatprep.subr.bf16.mxu0 %v1008_v58  ;;  %918 = vmatprep.subr.bf16.mxu1 %v1009_v59 }
  0x6b   :  { %897 = vmatpush3.bf16.msra.mxu0 %v1010_v60  ;;  %919 = vmatpush3.bf16.msra.mxu1 %v1011_v61 }
  0x6c   :  { %898 = vmatprep.subr.bf16.mxu0 %v1012_v62  ;;  %920 = vmatprep.subr.bf16.mxu1 %v1013_v63 }
  0x6f   :  { %899 = vmatpush3.bf16.msra.mxu0 %v1014_v0  ;;  %921 = vmatpush3.bf16.msra.mxu1 %v1015_v1 }
  0x70   :  { %900 = vmatprep.subr.bf16.mxu0 %v1016_v2  ;;  %922 = vmatprep.subr.bf16.mxu1 %v1017_v3 }
  0x73   :  { %901 = vmatpush3.bf16.msra.mxu0 %v1018_v4  ;;  %923 = vmatpush3.bf16.msra.mxu1 %v1019_v5 }
 0x116   :  { %v310_v20 = vpop.f32.mrf.mxu0  ;;  %v351_v21 = vpop.f32.mrf.mxu1 }
 0x117   :  { %v409_v26 = vmul.f32 %v392_v15, %v310_v20  ;;  %v411_v28 = vmul.f32 %v400_v16, %v351_v21  ;;  %v384_v29 = vadd.f32 %v367_v17, %v310_v20  ;;  %v386_v43 = vadd.f32 %v375_v27, %v351_v21 }
 0x118   :  { %v312_v30 = vpop.f32.mrf.mxu0  ;;  %v353_v33 = vpop.f32.mrf.mxu1 }
 0x119   :  { %v434_v35 = vadd.f32 %v417_v18, %v409_v26  ;;  %v436_v36 = vadd.f32 %v425_v19, %v411_v28  ;;  %v385_v37 = vadd.f32 %v371_v22, %v312_v30  ;;  %v410_v38 = vmul.f32 %v396_v23, %v312_v30 }
 0x11a   :  { %v387_v39 = vadd.f32 %v379_v24, %v353_v33  ;;  %v412_v40 = vmul.f32 %v404_v25, %v353_v33  ;;  %v314_v41 = vpop.f32.mrf.mxu0  ;;  %v355_v42 = vpop.f32.mrf.mxu1  ;;  %vm438_vm0 = vcmp.gt.f32.partialorder %v384_v29, 0.0  ;;  %vm440_vm4 = vcmp.gt.f32.partialorder %v386_v43, 0.0 }
 0x11b   :  { %v444_v44 = vmax.f32 %v436_v36, 0.0  ;;  %v435_v45 = vadd.f32 %v421_v31, %v410_v38  ;;  %v442_v49 = vmax.f32 %v434_v35, 0.0  ;;  %vm439_vm1 = vcmp.gt.f32.partialorder %v385_v37, 0.0  ;;  %vm877_vm3 = vmpackc.low %vm438_vm0, %vm438_vm0 }
 0x11c   :  { %v437_v46 = vadd.f32 %v429_v34, %v412_v40  ;;  %v315_v47 = vpop.f32.mrf.mxu0  ;;  %v356_v48 = vpop.f32.mrf.mxu1  ;;  %vm441_vm2 = vcmp.gt.f32.partialorder %v387_v39, 0.0  ;;  %vm874_vm5 = vmpackc.low %vm439_vm1, %vm439_vm1 }
 0x11d   :  { %v443_v50 = vmax.f32 %v435_v45, 0.0  ;;  %v884_v52 = vpack.c.bf16 %v444_v44, %v444_v44  ;;  %v878_v55 = vpack.c.bf16 %v442_v49, %v442_v49  ;;  %vm880_vm6 = vmpackc.low %vm441_vm2, %vm441_vm2 }
 0x11e   :  { %v445_v51 = vmax.f32 %v437_v46, 0.0  ;;  %vm883_vm7 = vmpackc.low %vm440_vm4, %vm440_vm4 }
 0x11f   :  { %v875_v53 = vpack.c.bf16 %v443_v50, %v443_v50 }
 0x120   :  { %v881_v54 = vpack.c.bf16 %v445_v51, %v445_v51 }
 0x121   :  { %876 = vmatprep.mubr.msk.bf16.mxu0 %vm874_vm5, %v875_v53 }
 0x122   :  { %882 = vmatprep.mubr.msk.bf16.mxu1 %vm880_vm6, %v881_v54  ;;  %879 = vmatmul.mubr.msk.bf16.vlgmr.msra.gmra.mxu0 %vm877_vm3, %v878_v55 }
 0x123   :  { %885 = vmatmul.mubr.msk.bf16.vlgmr.msra.gmra.mxu1 %vm883_vm7, %v884_v52 }
 0x1e2   :  { %v902_v56 = vpop.f32.mrf.mxu0 }
 0x1e3   :  { %v924_v57 = vpop.f32.mrf.mxu1 }
 0x1e4   :  { %v903_v58 = vpop.f32.mrf.mxu0 }
 0x1e5   :  { %v925_v59 = vpop.f32.mrf.mxu1  ;;  %v904_v60 = vadd.f32 %v903_v58, %v902_v56 }
 0x1e6   :  { %v905_v61 = vpop.f32.mrf.mxu0  ;;  %v926_v0 = vadd.f32 %v925_v59, %v924_v57 }
 0x1e7   :  { %v927_v62 = vpop.f32.mrf.mxu1  ;;  %v745_v63 = vadd.f32 %v904_v60, %v1183_v32 }
 0x1e8   :  { %v906_v1 = vpop.f32.mrf.mxu0 }
 0x1e9   :  { %v928_v2 = vpop.f32.mrf.mxu1  ;;  %v785_v3 = vadd.f32 %v926_v0, %v745_v63 }
 0x1eb   :  { %v790_v4 = vpack.c.bf16 %v785_v3, %v785_v3 }
 0x1ed   :  { %791 = vst [vmem:[#allocation10] sm:$0xf] %v790_v4 }
 0x1ee   :  { %1111 = shalt.err (!%p1108_p10)
}
 0x1ef   :  { %801 = dma.vmem_to_hbm [thread:$0]  %s799_s15, 64, %s1195_s5, [#allocation4]  }
 0x1f0   :  { %1126 = dma.done.wait [#allocation4], 64  }
 0x1f1   :  { %1127 = vsyncadd [#allocation4], 4294967232 }
 0x1f2   :  { %805 = vsyncpa [#allocation3], 1 }
 0x1f3   :  { %806 = vsyncpa [#allocation6], 1 }
 0x1f4   :  { %807 = vsyncpa [#allocation9], 1 }
 0x1f5   :  { %808 = vsyncpa [#allocation4], 1 }

</bundles_post_ra>
